<compile_context>
chip_gen: v7x
topology: tpu7x:2x2x1
jax: 0.10.0
libtpu: 0.0.40
codegen_flags: <defaults>
</compile_context>

<pallas_src>
import functools

import jax
import jax.numpy as jnp
from jax import lax
from jax.experimental import pallas as pl
from jax.experimental.pallas import tpu as pltpu

EPS = 1e-5                              # PyTorch nn.GroupNorm default
_DEFAULT_TILE_BYTES = 2 * 1024 * 1024   # lane-tile target for the tiled path


def _vmem_limit_bytes():
    """Generation-aware scoped-VMEM budget: ~3/4 of physical VMEM
    (~96 MiB on v5e/v6e with 128 MiB, ~48 MiB on v7x with 64 MiB)."""
    try:
        cap = int(pltpu.get_tpu_info().vmem_capacity_bytes)
    except Exception:
        cap = 64 * 1024 * 1024
    return min((cap * 3) // 4, 112 * 1024 * 1024)


def _choose_layout(C, HW):
    """Pick (hf, HWp): channel fold factor and (possibly padded) spatial size
    so the folded per-sample view (C*hf, HWp//hf) has a lane dim that is a
    multiple of 128 (lane-dense, unmasked stores) and, when cheap, >= 8
    sublanes.  Padding zeros do not perturb the statistics."""
    # Prefer an exact (zero-padding) fold.
    for hf in range(1, min(HW, 64) + 1):
        if HW % hf == 0 and C * hf >= 8 and (HW // hf) % 128 == 0:
            return hf, HW
    if HW % 128 == 0:
        return 1, HW                     # lane-dense already, just < 8 rows
    # Pad the lane axis to a multiple of hf*128; minimize padding and prefer
    # the larger fold (more sublanes) on ties.
    best = None
    for hf in range(max(1, -(-8 // C)), 0, -1):
        quantum = hf * 128
        HWp = -(-HW // quantum) * quantum
        key = (HWp, -hf)
        if best is None or key < best[0]:
            best = (key, hf, HWp)
    return best[1], best[2]


def _pick_lane_tile(L, Cf, itemsize, target_bytes):
    """Largest multiple-of-128 divisor of L whose (Cf, tile) block stays
    under target_bytes; falls back to the full lane extent."""
    best = None
    for lt in range(128, L + 1, 128):
        if L % lt == 0 and Cf * lt * itemsize <= target_bytes:
            best = lt
    return best if best is not None else L


def _pick_stat_chunk(L):
    """(lchunk, nchunks) for the fast path's single-traversal statistics:
    the largest chunk count <= 16 that exactly divides the lane extent."""
    nl = L // 128
    for c in range(min(nl, 16), 0, -1):
        if nl % c == 0:
            return L // c, c
    return L, 1


def _gn_fast_kernel(x_ref, gamma_ref, beta_ref, o_ref, *,
                    inv_cnt, lchunk, nchunks, epilogue):
    # x_ref / o_ref: (1, Cf, L) -- one whole (folded) sample, VMEM resident.
    # gamma_ref / beta_ref: (1, Cf, 1) f32.
    Cf = x_ref.shape[1]
    if nchunks > 1:
        # Single traversal of the block: each lane chunk is loaded once and
        # used for both partial sums (VPU adds only); the single cross-lane
        # reduce happens once at the end.  Fully unrolled (nchunks <= 16).
        p1 = jnp.zeros((1, Cf, lchunk), jnp.float32)
        p2 = jnp.zeros((1, Cf, lchunk), jnp.float32)
        for i in range(nchunks):
            c = x_ref[:, :, i * lchunk:(i + 1) * lchunk].astype(jnp.float32)
            p1 = p1 + c
            p2 = p2 + c * c
        s1, s2 = jnp.sum(p1), jnp.sum(p2)
    else:
        xf = x_ref[...].astype(jnp.float32)
        s1, s2 = jnp.sum(xf), jnp.sum(xf * xf)

    mean = s1 * inv_cnt
    var = jnp.maximum(s2 * inv_cnt - mean * mean, 0.0)   # clamp f32 cancellation
    inv_std = lax.rsqrt(var + EPS)
    scale = gamma_ref[...] * inv_std            # (1, Cf, 1)
    shift = beta_ref[...] - mean * scale        # (1, Cf, 1)
    y = x_ref[...].astype(jnp.float32) * scale + shift   # one broadcast FMA
    if epilogue is not None:
        y = epilogue(y)
    o_ref[...] = y.astype(o_ref.dtype)


def _gn_stats_kernel(x_ref, gamma_ref, beta_ref, scale_ref, shift_ref,
                     s1_ref, s2_ref, *, inv_cnt):
    # grid = (N, kt): accumulate s1/s2 over the lane tiles of sample n and
    # emit per-channel scale/shift on the last tile (standard accumulator
    # pattern: the tiny (1, Cf, 1) outputs are written only on the last k).
    k = pl.program_id(1)

    @pl.when(k == 0)
    def _init():
        s1_ref[...] = jnp.zeros_like(s1_ref)
        s2_ref[...] = jnp.zeros_like(s2_ref)

    xf = x_ref[...].astype(jnp.float32)
    s1_ref[...] += jnp.sum(xf)
    s2_ref[...] += jnp.sum(xf * xf)

    @pl.when(k == pl.num_programs(1) - 1)
    def _finalize():
        mean = s1_ref[...] * inv_cnt                           # (1, 1)
        var = jnp.maximum(s2_ref[...] * inv_cnt - mean * mean, 0.0)
        inv_std = lax.rsqrt(var + EPS)
        scale = gamma_ref[...] * inv_std                       # (1, Cf, 1)
        scale_ref[...] = scale
        shift_ref[...] = beta_ref[...] - mean * scale


def _gn_apply_kernel(x_ref, scale_ref, shift_ref, o_ref, *, epilogue):
    # Fully parallel normalize + affine (single FMA per element) plus an
    # optional fused elementwise epilogue.
    y = x_ref[...].astype(jnp.float32) * scale_ref[...] + shift_ref[...]
    if epilogue is not None:
        y = epilogue(y)
    o_ref[...] = y.astype(o_ref.dtype)


@functools.partial(jax.jit,
                   static_argnames=("force_tiled", "tile_bytes", "epilogue"))
def group_norm_pallas(x_nchw, gamma, beta, *, force_tiled=False,
                      tile_bytes=_DEFAULT_TILE_BYTES, epilogue=None):
    """GroupNorm(num_groups=1, num_channels=C) on an NCHW tensor, with an
    optional fused elementwise epilogue applied before the store."""
    N, C, H, W = x_nchw.shape
    HW = H * W
    hf, HWp = _choose_layout(C, HW)
    Cf, L = C * hf, HWp // hf

    xr = x_nchw.reshape(N, C, HW)
    if HWp != HW:
        # Lane-dense padding: zeros do not perturb s1/s2 (inv_cnt uses the
        # true count) and are sliced off below.
        # TODO(synk): fold the pad into the kernel's index map to avoid the
        # extra XLA pad copy on odd spatial sizes.
        xr = jnp.pad(xr, ((0, 0), (0, 0), (0, HWp - HW)))
    x = xr.reshape(N, Cf, L)

    gamma_f = jnp.repeat(gamma.astype(jnp.float32), hf).reshape(1, Cf, 1)
    beta_f = jnp.repeat(beta.astype(jnp.float32), hf).reshape(1, Cf, 1)

    inv_cnt = 1.0 / float(C * HW)               # true (unpadded) count
    itemsize = max(x_nchw.dtype.itemsize, 4)    # in-kernel math is f32
    block_bytes = Cf * L * itemsize
    vmem_limit = _vmem_limit_bytes()
    # Fast-path live footprint is ~5-6x the sample block (2x double-buffered
    # input, 2x double-buffered output, f32 temporaries).
    fast_budget = vmem_limit // 6

    if (not force_tiled) and block_bytes <= fast_budget:
        # VMEM-resident fast path: read x once, write once (2x HBM traffic).
        # TODO(synk): for v7x batch-1, one TensorCore idles here; a cross-core
        # stats combine (CMEM/VMEM_SHARED) would recover the 2x for N == 1.
        lchunk, nchunks = _pick_stat_chunk(L)
        out = pl.pallas_call(
            functools.partial(_gn_fast_kernel, inv_cnt=inv_cnt,
                              lchunk=lchunk, nchunks=nchunks,
                              epilogue=epilogue),
            out_shape=jax.ShapeDtypeStruct((N, Cf, L), x.dtype),
            grid_spec=pltpu.PrefetchScalarGridSpec(
                num_scalar_prefetch=0,
                grid=(N,),
                in_specs=[
                    pl.BlockSpec((1, Cf, L), lambda n: (n, 0, 0)),
                    pl.BlockSpec((1, Cf, 1), lambda n: (0, 0, 0)),
                    pl.BlockSpec((1, Cf, 1), lambda n: (0, 0, 0)),
                ],
                out_specs=pl.BlockSpec((1, Cf, L), lambda n: (n, 0, 0)),
            ),
            compiler_params=pltpu.CompilerParams(
                dimension_semantics=("parallel",),
                vmem_limit_bytes=vmem_limit),
        )(x, gamma_f, beta_f)
    else:
        # Large samples: stats pallas_call then a fully parallel apply
        # pallas_call (2 reads + 1 write of x total).
        lt = _pick_lane_tile(L, Cf, itemsize, tile_bytes)
        kt = L // lt

        scale, shift = pl.pallas_call(
            functools.partial(_gn_stats_kernel, inv_cnt=inv_cnt),
            out_shape=(jax.ShapeDtypeStruct((N, Cf, 1), jnp.float32),
                       jax.ShapeDtypeStruct((N, Cf, 1), jnp.float32)),
            grid_spec=pltpu.PrefetchScalarGridSpec(
                num_scalar_prefetch=0,
                grid=(N, kt),
                in_specs=[
                    pl.BlockSpec((1, Cf, lt), lambda n, k: (n, 0, k)),
                    pl.BlockSpec((1, Cf, 1), lambda n, k: (0, 0, 0)),
                    pl.BlockSpec((1, Cf, 1), lambda n, k: (0, 0, 0)),
                ],
                out_specs=[
                    pl.BlockSpec((1, Cf, 1), lambda n, k: (n, 0, 0)),
                    pl.BlockSpec((1, Cf, 1), lambda n, k: (n, 0, 0)),
                ],
                scratch_shapes=[
                    pltpu.VMEM((1, 1), jnp.float32),   # s1 accumulator
                    pltpu.VMEM((1, 1), jnp.float32),   # s2 accumulator
                ],
            ),
            compiler_params=pltpu.CompilerParams(
                dimension_semantics=("parallel", "arbitrary"),
                vmem_limit_bytes=vmem_limit),
        )(x, gamma_f, beta_f)

        out = pl.pallas_call(
            functools.partial(_gn_apply_kernel, epilogue=epilogue),
            out_shape=jax.ShapeDtypeStruct((N, Cf, L), x.dtype),
            grid_spec=pltpu.PrefetchScalarGridSpec(
                num_scalar_prefetch=0,
                grid=(N, kt),
                in_specs=[
                    pl.BlockSpec((1, Cf, lt), lambda n, k: (n, 0, k)),
                    pl.BlockSpec((1, Cf, 1), lambda n, k: (n, 0, 0)),
                    pl.BlockSpec((1, Cf, 1), lambda n, k: (n, 0, 0)),
                ],
                out_specs=pl.BlockSpec((1, Cf, lt), lambda n, k: (n, 0, k)),
            ),
            compiler_params=pltpu.CompilerParams(
                dimension_semantics=("parallel", "parallel"),
                vmem_limit_bytes=vmem_limit),
        )(x, scale, shift)

    out = out.reshape(N, C, HWp)
    if HWp != HW:
        out = out[:, :, :HW]
    return out.reshape(N, C, H, W)


def pre_norm(x_nchw, gamma, beta, fn, *, fuse_fn_elementwise=False, **kwargs):
    """PreNorm.forward: fn(GroupNorm(1, dim)(x), **kwargs).

    If `fn` is a cheap elementwise function (SiLU, scaling, ...) pass
    `fuse_fn_elementwise=True` to apply it inside the kernel epilogue and
    save a full HBM read+write of the activation."""
    if fuse_fn_elementwise and not kwargs:
        return group_norm_pallas(x_nchw, gamma, beta, epilogue=fn)
    # TODO(synk): a general wrapped module (e.g. the UNet attention block)
    # cannot be fused into the norm kernel; it is applied as plain JAX here.
    normed = group_norm_pallas(x_nchw, gamma, beta)
    return fn(normed, **kwargs)


def _groupnorm_ref(x, gamma, beta):
    # Pure-JAX reference for GroupNorm(1, C) on NCHW.
    N, C, H, W = x.shape
    xf = x.reshape(N, -1).astype(jnp.float32)
    mean = xf.mean(axis=1, keepdims=True)
    var = ((xf - mean) ** 2).mean(axis=1, keepdims=True)
    xn = ((xf - mean) / jnp.sqrt(var + EPS)).reshape(N, C, H, W)
    return xn * gamma.reshape(1, C, 1, 1) + beta.reshape(1, C, 1, 1)


if __name__ == "__main__":
    key = jax.random.PRNGKey(0)
    k_x, k_g, k_b, k_x2, k_x4 = jax.random.split(key, 5)

    ident = lambda y: y

    # Case 1: module-sized input (dim = C = 4) -> VMEM-resident fast path
    # (folds to (N, 8, 128): >= 8 sublanes, lane-dense 128-wide blocks).
    N, C, H, W = 2, 4, 16, 16
    x = jax.random.normal(k_x, (N, C, H, W), dtype=jnp.float32)
    gamma = 1.0 + 0.1 * jax.random.normal(k_g, (C,), dtype=jnp.float32)
    beta = 0.1 * jax.random.normal(k_b, (C,), dtype=jnp.float32)

    out = jax.block_until_ready(pre_norm(x, gamma, beta, ident))
    ref = _groupnorm_ref(x, gamma, beta)
    assert out.shape == (N, C, H, W)
    assert jnp.allclose(out, ref, atol=1e-4, rtol=1e-4), "fast path mismatch"

    # Case 2: forced tiled stats+apply path (small tile budget so kt > 1).
    N2, C2, H2, W2 = 2, 8, 32, 32
    x2 = jax.random.normal(k_x2, (N2, C2, H2, W2), dtype=jnp.float32)
    gamma2 = 1.0 + 0.1 * jax.random.normal(k_g, (C2,), dtype=jnp.float32)
    beta2 = 0.1 * jax.random.normal(k_b, (C2,), dtype=jnp.float32)
    out2 = jax.block_until_ready(
        group_norm_pallas(x2, gamma2, beta2, force_tiled=True,
                          tile_bytes=16 * 1024))
    ref2 = _groupnorm_ref(x2, gamma2, beta2)
    assert jnp.allclose(out2, ref2, atol=1e-4, rtol=1e-4), "tiled path mismatch"

    # Case 3: same input on the fast path (exercises the single-traversal
    # chunked statistics, nchunks > 1).
    out3 = jax.block_until_ready(group_norm_pallas(x2, gamma2, beta2))
    assert jnp.allclose(out3, ref2, atol=1e-4, rtol=1e-4), "chunked stats mismatch"

    # Case 4: fused elementwise fn (SiLU) epilogue.
    out4 = jax.block_until_ready(
        pre_norm(x, gamma, beta, jax.nn.silu, fuse_fn_elementwise=True))
    ref4 = jax.nn.silu(ref)
    assert jnp.allclose(out4, ref4, atol=1e-4, rtol=1e-4), "fused epilogue mismatch"

    # Case 5: odd spatial size (HW not a multiple of 128) -> padded lane axis.
    N5, C5, H5, W5 = 1, 4, 10, 10
    x5 = jax.random.normal(k_x4, (N5, C5, H5, W5), dtype=jnp.float32)
    out5 = jax.block_until_ready(group_norm_pallas(x5, gamma, beta))
    ref5 = _groupnorm_ref(x5, gamma, beta)
    assert out5.shape == (N5, C5, H5, W5)
    assert jnp.allclose(out5, ref5, atol=1e-4, rtol=1e-4), "padded path mismatch"

    print("KERNEL_OK")
</pallas_src>

<mosaic_0001>
module attributes {stable_mosaic.version = 11 : i64} {
  func.func @_gn_fast_kernel(%arg0: i32, %arg1: memref<1x8x128xf32, #tpu.memory_space<vmem>>, %arg2: memref<1x8x1xf32, #tpu.memory_space<vmem>>, %arg3: memref<1x8x1xf32, #tpu.memory_space<vmem>>, %arg4: memref<1x8x128xf32, #tpu.memory_space<vmem>>) attributes {dimension_semantics = [#tpu.dimension_semantics<parallel>], iteration_bounds = array<i64: 2>, scalar_prefetch = 0 : i64, scratch_operands = 0 : i64, tpu.core_type = #tpu.core_type<tc>, window_params = [{transform_indices = @transform_0, window_bounds = array<i64: 1, 8, 128>}, {pipeline_mode = #tpu.pipeline_mode<synchronous>, transform_indices = @transform_1, window_bounds = array<i64: 1, 8, 1>}, {pipeline_mode = #tpu.pipeline_mode<synchronous>, transform_indices = @transform_2, window_bounds = array<i64: 1, 8, 1>}, {transform_indices = @transform_3, window_bounds = array<i64: 1, 8, 128>}]} {
    %c0 = arith.constant 0 : index
    %c0_0 = arith.constant 0 : index
    %c0_1 = arith.constant 0 : index
    %0 = vector.load %arg1[%c0, %c0_0, %c0_1] : memref<1x8x128xf32, #tpu.memory_space<vmem>>, vector<1x8x128xf32>
    %1 = vector.shape_cast %0 : vector<1x8x128xf32> to vector<1x1x8x128xf32>
    %cst = arith.constant dense<0.000000e+00> : vector<1xf32>
    %2 = vector.multi_reduction <add>, %1, %cst [1, 2, 3] : vector<1x1x8x128xf32> to vector<1xf32>
    %3 = vector.shape_cast %2 : vector<1xf32> to vector<1x1x1x1xf32>
    %4 = vector.extract %3[0, 0, 0, 0] : f32 from vector<1x1x1x1xf32>
    %5 = arith.mulf %0, %0 : vector<1x8x128xf32>
    %6 = vector.shape_cast %5 : vector<1x8x128xf32> to vector<1x1x8x128xf32>
    %cst_2 = arith.constant dense<0.000000e+00> : vector<1xf32>
    %7 = vector.multi_reduction <add>, %6, %cst_2 [1, 2, 3] : vector<1x1x8x128xf32> to vector<1xf32>
    %8 = vector.shape_cast %7 : vector<1xf32> to vector<1x1x1x1xf32>
    %9 = vector.extract %8[0, 0, 0, 0] : f32 from vector<1x1x1x1xf32>
    %cst_3 = arith.constant 9.765625E-4 : f32
    %10 = arith.mulf %4, %cst_3 : f32
    %cst_4 = arith.constant 9.765625E-4 : f32
    %11 = arith.mulf %9, %cst_4 : f32
    %12 = arith.mulf %10, %10 : f32
    %13 = arith.subf %11, %12 : f32
    %cst_5 = arith.constant 0.000000e+00 : f32
    %14 = arith.maximumf %13, %cst_5 : f32
    %cst_6 = arith.constant 9.99999974E-6 : f32
    %15 = arith.addf %14, %cst_6 : f32
    %16 = math.rsqrt %15 : f32
    %c0_7 = arith.constant 0 : index
    %c0_8 = arith.constant 0 : index
    %c0_9 = arith.constant 0 : index
    %17 = vector.load %arg2[%c0_7, %c0_8, %c0_9] : memref<1x8x1xf32, #tpu.memory_space<vmem>>, vector<1x8x1xf32>
    %18 = vector.broadcast %16 : f32 to vector<1x8x1xf32>
    %19 = arith.mulf %17, %18 : vector<1x8x1xf32>
    %c0_10 = arith.constant 0 : index
    %c0_11 = arith.constant 0 : index
    %c0_12 = arith.constant 0 : index
    %20 = vector.load %arg3[%c0_10, %c0_11, %c0_12] : memref<1x8x1xf32, #tpu.memory_space<vmem>>, vector<1x8x1xf32>
    %21 = vector.broadcast %10 : f32 to vector<1x8x1xf32>
    %22 = arith.mulf %21, %19 : vector<1x8x1xf32>
    %23 = arith.subf %20, %22 : vector<1x8x1xf32>
    %c0_13 = arith.constant 0 : index
    %c0_14 = arith.constant 0 : index
    %c0_15 = arith.constant 0 : index
    %24 = vector.load %arg1[%c0_13, %c0_14, %c0_15] : memref<1x8x128xf32, #tpu.memory_space<vmem>>, vector<1x8x128xf32>
    %25 = vector.broadcast %19 : vector<1x8x1xf32> to vector<1x8x128xf32>
    %26 = arith.mulf %24, %25 : vector<1x8x128xf32>
    %27 = vector.broadcast %23 : vector<1x8x1xf32> to vector<1x8x128xf32>
    %28 = arith.addf %26, %27 : vector<1x8x128xf32>
    %c0_16 = arith.constant 0 : index
    %c0_17 = arith.constant 0 : index
    %c0_18 = arith.constant 0 : index
    %29 = vector.load %arg4[%c0_16, %c0_17, %c0_18] : memref<1x8x128xf32, #tpu.memory_space<vmem>>, vector<1x8x128xf32>
    tpu.vector_store %arg4[%c0_16, %c0_17, %c0_18], %28 {strides = array<i32>} : memref<1x8x128xf32, #tpu.memory_space<vmem>>, vector<1x8x128xf32>,
    return
  }
  func.func @transform_0(%arg0: i32) -> (i32, i32, i32) {
    %c0_i32 = arith.constant 0 : i32
    %c0_i32_0 = arith.constant 0 : i32
    %c0_i32_1 = arith.constant 0 : i32
    return %arg0, %c0_i32, %c0_i32_0 : i32, i32, i32
  }
  func.func @transform_1(%arg0: i32) -> (i32, i32, i32) {
    %c0_i32 = arith.constant 0 : i32
    %c0_i32_0 = arith.constant 0 : i32
    %c0_i32_1 = arith.constant 0 : i32
    %c0_i32_2 = arith.constant 0 : i32
    return %c0_i32, %c0_i32_0, %c0_i32_1 : i32, i32, i32
  }
  func.func @transform_2(%arg0: i32) -> (i32, i32, i32) {
    %c0_i32 = arith.constant 0 : i32
    %c0_i32_0 = arith.constant 0 : i32
    %c0_i32_1 = arith.constant 0 : i32
    %c0_i32_2 = arith.constant 0 : i32
    return %c0_i32, %c0_i32_0, %c0_i32_1 : i32, i32, i32
  }
  func.func @transform_3(%arg0: i32) -> (i32, i32, i32) {
    %c0_i32 = arith.constant 0 : i32
    %c0_i32_0 = arith.constant 0 : i32
    %c0_i32_1 = arith.constant 0 : i32
    return %arg0, %c0_i32, %c0_i32_0 : i32, i32, i32
  }
}

</mosaic_0001>

<bundles_post_ra>
// kernel: group_norm_pallas.1
= control target key start
LH: loop header
LB: loop body
LE: loop exit
PB: predicated region body
PF: predicated region fallthrough
CT: control target
= control target key end

     0   :  { %s327_s12 = smov 0   ;;  %s357_s0 = inlined_call_operand.vmem [shape: f32[2,8,128], index: 0, kind: input, shape index: {}]   ;;  %s358_s1 = inlined_call_operand.vmem [shape: f32[1,8,1], index: 1, kind: input, shape index: {}]   ;;  %s359_s2 = inlined_call_operand.vmem [shape: f32[1,8,1], index: 2, kind: input, shape index: {}]   ;;  %s360_s3 = inlined_call_operand.vmem [shape: f32[2,8,128], index: 3, kind: output, shape index: {}]  }
   0x1 LB: > { %s268_s13 = sadd.s32 4294967295, %s303_s12   ;;  %p272_p0 = scmp.ge.s32.totalorder %s303_s12, 1  ;;  %s303_s12 = sphi %s327_s12, %s13_s12  }
   0x2   : > { %p136_p1 = scmp.lt.s32.totalorder %s303_s12, 3 }
   0x4   : > { %p137_p2 = pnand %p272_p0, %p136_p1 }
   0x5   : > { %p158_p3 = scmp.lt.s32.totalorder (!%p137_p2), %s268_s13, 1  ;;  %v305_v12 = vmov (!%p137_p2), 0   ;;  %s306_s24 = smov (!%p137_p2), 0.0   ;;  %v195_v19 = vld [vmem:[%s358_s1] sm:$0xff] (!%p137_p2) }
   0x6   : > { %140 = sbr.rel (%p137_p2) target bundleno = 432 (0x1b0), region = 32  ;;  %293 = vset.pattern.permute.xlu1 (!%p137_p2), %v305_v12  ;;  %294 = vset.pattern.permute.xlu0 (!%p137_p2), %v305_v12  ;;  %v198_v23 = vld [vmem:[%s359_s2] sm:$0xff] (!%p137_p2) }
   0xd   : > { %s362_s13 = smov (!%p158_p3, %s268_s13), 1 }
   0xe   : > { %s273_s14 = sshll.u32 %s362_s13, 3 }
   0xf   : > { %s161_s17 = scalar_lea.vmem %s357_s0, %s273_s14  ;;  %s165_s7 = scalar_lea.vmem %s360_s3, %s273_s14 }
  0x10   : > { %v166_v0 = vld [vmem:[%s161_s17] sm:$0xff] }
  0x11   : > { %167 = vadd.xlane.f32.xlu0 %v166_v0  ;;  %v176_v1 = vmul.f32 %v166_v0, %v166_v0 }
  0x15   : > { %177 = vadd.xlane.f32.xlu0 %v176_v1 }
  0x9e   : > { %v168_v2 = vpop.xlane.xlu0 %167 }
  0x9f   : > { %v169_v3 = vrot.slane %v168_v2, 4 }
  0xa1   : > { %v170_v4 = vadd.f32 %v169_v3, %v168_v2 }
  0xa2   : > { %v178_v5 = vpop.xlane.xlu0 %177 }
  0xa3   : > { %v171_v6 = vrot.slane %v170_v4, 2  ;;  %v179_v7 = vrot.slane %v178_v5, 4 }
  0xa5   : > { %v180_v8 = vadd.f32 %v179_v7, %v178_v5  ;;  %v172_v9 = vadd.f32 %v171_v6, %v170_v4 }
  0xa7   : > { %v181_v10 = vrot.slane %v180_v8, 2  ;;  %v173_v11 = vrot.slane %v172_v9, 1 }
  0xa9   : > { %v182_v13 = vadd.f32 %v181_v10, %v180_v8  ;;  %v174_v14 = vadd.f32 %v173_v11, %v172_v9 }
  0xab   : > { %277 = vpush %v174_v14  ;;  %v183_v15 = vrot.slane %v182_v13, 1 }
  0xad   : > { %v184_v16 = vadd.f32 %v183_v15, %v182_v13 }
  0xaf   : > { %279 = vpush %v184_v16 }
  0xdc   : > { %s278_s18 = spop %277 }
  0xdd   : > { %s186_s19 = smul.f32 0.0009765625, %s278_s18 }
  0xdf   : > { %s188_s20 = smul.f32 %s186_s19, %s186_s19  ;;  %v199_v22 = vstv %s186_s19 }
  0xe0   : > { %s280_s21 = spop %279 }
  0xe1   : > { %s187_s22 = smul.f32 0.0009765625, %s280_s21 }
  0xe3   : > { %s189_s23 = ssub.f32 %s187_s22, %s188_s20 }
  0xe5   : > { %s190_s25 = smax.f32 %s306_s24, %s189_s23 }
  0xe6   : > { %s191_s26 = sadd.f32 1e-05, %s190_s25 }
  0xe8   : > { %v192_v17 = vstv %s191_s26 }
  0xe9   : > { %295 = vrsqrt.f32 %v192_v17 }
  0xf3   : > { %v296_v18 = vpop.eup %295 }
  0xf4   : > { %281 = vpush %v296_v18 }
 0x125   : > { %s282_s29 = spop %281 }
 0x126   : > { %v196_v20 = vstv %s282_s29 }
 0x127   : > { %v197_v21 = vmul.f32 %v196_v20, %v195_v19 }
 0x129   : > { %v200_v24 = vmul.f32 %v199_v22, %v197_v21  ;;  %204 = vperm.xlu1 %293, %v197_v21  }
 0x12b   : > { %v201_v25 = vsub.f32 %v198_v23, %v200_v24 }
 0x12d   : > { %210 = vperm.xlu1 %293, %v201_v25  }
 0x1a8   : > { %v205_v26 = vpop.permute.xlu1 %204 }
 0x1a9   : > { %v207_v27 = vmul.f32 %v205_v26, %v166_v0 }
 0x1ac   : > { %v211_v28 = vpop.permute.xlu1 %210 }
 0x1ad   : > { %v213_v29 = vadd.f32 %v211_v28, %v207_v27 }
 0x1af   : > { %214 = vst [vmem:[%s165_s7] sm:$0xff] %v213_v29 }
 0x1b0 PF: > { %s13_s12 = sadd.s32 1, %s303_s12  }
 0x1b1   : > { %p10_p4 = scmp.ge.s32.totalorder %s13_s12, 4  }
 0x1b3   :  { %12 = sbr.rel (!%p10_p4) target bundleno = 1 (0x1), region = 62 }

</bundles_post_ra>
